<compile_context>
chip_gen: v7x
topology: tpu7x:2x2x1
jax: 0.10.0
libtpu: 0.0.40
codegen_flags: <defaults>
</compile_context>

<pallas_src>
import jax
import jax.numpy as jnp
from jax.experimental import pallas as pl
from jax.experimental.pallas import tpu as pltpu


# ----------------------------------------------------------------------------
# Minimal stand-in for su2.Irreps: a list of (mul, l) pairs.
# ----------------------------------------------------------------------------
def irreps_dim(irreps):
    return sum(mul * (2 * l + 1) for mul, l in irreps)


def make_output_mask(irreps):
    # torch.cat([torch.ones(mul*(2l+1)) ...]) == ones of the total dim.
    return jnp.ones((irreps_dim(irreps),), dtype=jnp.float32)


# ----------------------------------------------------------------------------
# Pallas kernel: tile pass-through (only used when an explicit kernel boundary
# is wanted; the module's __call__ avoids it entirely).
# ----------------------------------------------------------------------------
def _identity_kernel(x_ref, o_ref):
    o_ref[...] = x_ref[...]


def _pallas_copy_2d(x2, max_rows=512):
    """Pipelined, aliased pass-through of a 2-D array (rows on sublanes)."""
    rows, lanes = x2.shape
    tb = min(rows, max_rows)
    if tb != rows and tb % 8 != 0:
        tb = max(8, (tb // 8) * 8)  # keep sublane-aligned tiles
    grid = (pl.cdiv(rows, tb),)
    return pl.pallas_call(
        _identity_kernel,
        out_shape=jax.ShapeDtypeStruct((rows, lanes), x2.dtype),
        grid=grid,
        in_specs=[pl.BlockSpec((tb, lanes), lambda i: (i, 0))],
        out_specs=pl.BlockSpec((tb, lanes), lambda i: (i, 0)),
        input_output_aliases={0: 0},  # no second HBM buffer for an identity
        compiler_params=pltpu.CompilerParams(
            dimension_semantics=("parallel",),  # v7x: shard tiles across 2 TCs
        ),
    )(x2)


def identity_forward_pallas(features):
    """Identity via a Pallas pass-through kernel (lane-dense when possible)."""
    orig_shape = features.shape
    total = features.size
    if total % 128 == 0:
        # Lane-dense view: last dim = 128 -> full-width (unmasked) stores.
        x2 = features.reshape(total // 128, 128)
        out = _pallas_copy_2d(x2)
        return out.reshape(orig_shape)
    # Fallback: keep the trailing feature axis as-is (full-extent block on
    # the lane dim); only hit when total elements is not a multiple of 128.
    if features.ndim >= 2:
        x2 = features.reshape(orig_shape[0], -1)
    else:
        x2 = features.reshape(1, -1)
    out = _pallas_copy_2d(x2)
    return out.reshape(orig_shape)


class Identity:
    def __init__(self, irreps_in, irreps_out):
        # simplify() + equality check of the PyTorch module
        self.irreps_in = list(irreps_in)
        self.irreps_out = list(irreps_out)
        assert self.irreps_in == self.irreps_out
        self.output_mask = make_output_mask(self.irreps_out)

    def __call__(self, features):
        # forward() is a pure identity: the optimal "kernel" is returning the
        # input unchanged (0 bytes of HBM traffic, no launch overhead).
        return features

    def forward_pallas(self, features):
        # Explicit Pallas pass-through for when a kernel boundary is desired.
        return identity_forward_pallas(features)


if __name__ == "__main__":
    # irreps = 8x l=0 + 8x l=1  ->  dim = 8*1 + 8*3 = 32
    irreps = [(8, 0), (8, 1)]
    mod = Identity(irreps, irreps)

    batch = 8
    dim = irreps_dim(irreps)  # 32
    key = jax.random.PRNGKey(0)
    x = jax.random.normal(key, (batch, dim), dtype=jnp.float32)

    # Hot path: zero-cost identity.
    y_fast = mod(x)
    assert y_fast is x

    # Pallas pass-through kernel (lane-dense (2, 128) view, aliased in/out).
    y = mod.forward_pallas(x)
    jax.block_until_ready(y)

    assert y.shape == x.shape and y.dtype == x.dtype
    assert jnp.array_equal(y, x)
    assert mod.output_mask.shape == (dim,)
    assert jnp.all(mod.output_mask == 1.0)

    print("KERNEL_OK")
</pallas_src>

<mosaic_0001>
module attributes {stable_mosaic.version = 11 : i64} {
  func.func @_identity_kernel(%arg0: i32, %arg1: memref<2x128xf32, #tpu.memory_space<vmem>>, %arg2: memref<2x128xf32, #tpu.memory_space<vmem>>) attributes {dimension_semantics = [#tpu.dimension_semantics<parallel>], iteration_bounds = array<i64: 1>, scalar_prefetch = 0 : i64, scratch_operands = 0 : i64, tpu.core_type = #tpu.core_type<tc>, window_params = [{transform_indices = @transform_0, window_bounds = array<i64: 2, 128>}, {transform_indices = @transform_1, window_bounds = array<i64: 2, 128>}]} {
    %c0 = arith.constant 0 : index
    %c0_0 = arith.constant 0 : index
    %0 = vector.load %arg1[%c0, %c0_0] : memref<2x128xf32, #tpu.memory_space<vmem>>, vector<2x128xf32>
    %c0_1 = arith.constant 0 : index
    %c0_2 = arith.constant 0 : index
    %1 = vector.load %arg2[%c0_1, %c0_2] : memref<2x128xf32, #tpu.memory_space<vmem>>, vector<2x128xf32>
    tpu.vector_store %arg2[%c0_1, %c0_2], %0 {strides = array<i32>} : memref<2x128xf32, #tpu.memory_space<vmem>>, vector<2x128xf32>,
    return
  }
  func.func @transform_0(%arg0: i32) -> (i32, i32) {
    %c0_i32 = arith.constant 0 : i32
    %c0_i32_0 = arith.constant 0 : i32
    return %arg0, %c0_i32 : i32, i32
  }
  func.func @transform_1(%arg0: i32) -> (i32, i32) {
    %c0_i32 = arith.constant 0 : i32
    %c0_i32_0 = arith.constant 0 : i32
    return %arg0, %c0_i32 : i32, i32
  }
}

</mosaic_0001>

<bundles_post_ra>
// kernel: tpu_custom_call.1
= control target key start
LH: loop header
LB: loop body
LE: loop exit
PB: predicated region body
PF: predicated region fallthrough
CT: control target
= control target key end

     0   :  { %6 = vsyncpa [#allocation3], 0  ;;  %s124_s0 = inlined_call_operand.hbm [shape: f32[2,128], index: 0, kind: input, shape index: {}, may-alias: {0,1}]   ;;  %s125_s1 = inlined_call_operand.hbm [shape: f32[2,128], index: 1, kind: output, shape index: {}, may-alias: {0,1}]  }
   0x1   :  { %7 = vsyncpa [#allocation4], 0  ;;  %s88_s6 = smov [#allocation2]   ;;  %s40_s10 = scalar_lea.hbm %s124_s0, 32 }
   0x2   :  { %s14_s7 = sshll.u32 %s88_s6, 4  ;;  %p41_p0 = scmp.ne.s32.totalorder %s124_s0, %s40_s10  ;;  %s15_s7 = int_to_ptr.vmem [resolvable:$true] %s14_s7 }
   0x3   :  { %p44_p1 = scmp.lt.u32.totalorder %s40_s10, %s124_s0 }
   0x5   :  { %p46_p2 = pnand %p44_p1, %p41_p0 }
   0x7   :  { %49 = shalt.err (!%p46_p2)
}
   0x8   :  { %s50_s15 = scalar_lea.vmem %s15_s7, 32  ;;  %p55_p4 = scmp.lt.s32.totalorder %s15_s7, %s15_s7 }
   0x9   :  { %p51_p3 = scmp.ne.s32.totalorder %s15_s7, %s50_s15  ;;  %p56_p5 = scmp.lt.s32.totalorder %s50_s15, %s50_s15 }
   0xb   :  { %p57_p6 = por %p56_p5, %p55_p4 }
   0xd   :  { %p58_p7 = pnand %p57_p6, %p51_p3 }
   0xf   :  { %61 = shalt.err (!%p58_p7)
}
  0x10   :  { %17 = dma.hbm_to_vmem [thread:$0]  %s124_s0, 32, %s15_s7, [#allocation3]  }
  0x11   :  { %84 = dma.done.wait [#allocation3], 32  }
  0x12   :  { %85 = vsyncadd [#allocation3], 4294967264  ;;  %s89_s18 = smov [#allocation5]   ;;  %v21_v0 = vld [vmem:[#allocation2] sm:$0x3] }
  0x13   :  { %s29_s19 = sshll.u32 %s89_s18, 4  ;;  %22 = vst [vmem:[#allocation5] sm:$0x3] %v21_v0  ;;  %s30_s19 = int_to_ptr.vmem [resolvable:$true] %s29_s19 }
  0x14   :  { %s62_s20 = scalar_lea.vmem %s30_s19, 32  ;;  %p67_p9 = scmp.lt.s32.totalorder %s30_s19, %s30_s19 }
  0x15   :  { %p63_p8 = scmp.ne.s32.totalorder %s30_s19, %s62_s20  ;;  %p68_p10 = scmp.lt.s32.totalorder %s62_s20, %s62_s20 }
  0x17   :  { %p69_p11 = por %p68_p10, %p67_p9 }
  0x19   :  { %p70_p12 = pnand %p69_p11, %p63_p8 }
  0x1b   :  { %73 = shalt.err (!%p70_p12)
}
  0x1c   :  { %s74_s23 = scalar_lea.hbm %s125_s1, 32 }
  0x1d   :  { %p75_p13 = scmp.ne.s32.totalorder %s125_s1, %s74_s23  ;;  %p78_p0 = scmp.lt.u32.totalorder %s74_s23, %s125_s1 }
  0x1f   :  { %p80_p1 = pnand %p78_p0, %p75_p13 }
  0x21   :  { %83 = shalt.err (!%p80_p1)
}
  0x22   :  { %32 = dma.vmem_to_hbm [thread:$0]  %s30_s19, 32, %s125_s1, [#allocation4]  }
  0x23   :  { %86 = dma.done.wait [#allocation4], 32  }
  0x24   :  { %87 = vsyncadd [#allocation4], 4294967264 }
  0x25   :  { %36 = vsyncpa [#allocation3], 1 }
  0x26   :  { %37 = vsyncpa [#allocation4], 1 }

</bundles_post_ra>
